<compile_context>
chip_gen: v7x
topology: tpu7x:2x2x1
jax: 0.10.0
libtpu: 0.0.40
codegen_flags: <defaults>
</compile_context>

<pallas_src>
import functools

import jax
import jax.numpy as jnp
from jax.experimental import pallas as pl
from jax.experimental.pallas import tpu as pltpu


def _softplus(x):
    # F.softplus(x) == log(1 + exp(x)); logaddexp is the numerically stable form.
    return jnp.logaddexp(x, 0.0)


def tide_kernel(u_ref, ii_ref, ij_ref, scal_ref, out_ref):
    """One batch tile.

    u_ref / ii_ref / ij_ref : (D, TB) bf16 embedding vectors, batch on lanes
    scal_ref                : (6, TB) f32 rows = [q_i, b_i, pop_i, q_j, b_j, pop_j]
    out_ref                 : (3, TB) f32 rows = [pred_i, pred_j, per-row sq-norm]
    """
    # Upcast once; all reductions / transcendentals in f32 (tolerance).
    u = u_ref[...].astype(jnp.float32)
    ii = ii_ref[...].astype(jnp.float32)
    ij = ij_ref[...].astype(jnp.float32)
    scal = scal_ref[...]

    # Row-wise dot products: VPU multiply + sublane reduce -> lane-dense (1, TB).
    dot_i = jnp.sum(u * ii, axis=0, keepdims=True)
    dot_j = jnp.sum(u * ij, axis=0, keepdims=True)

    # Per-example contribution to reg_loss; summed / scaled in the wrapper so
    # the batch grid axis stays parallel (no serial accumulator).
    sq = jnp.sum(u * u + ii * ii + ij * ij, axis=0, keepdims=True)

    qi, bi, pi_ = scal[0:1], scal[1:2], scal[2:3]
    qj, bj, pj_ = scal[3:4], scal[4:5], scal[5:6]

    # TIDE popularity terms.
    pop_i = _softplus(qi) + _softplus(bi) * pi_
    pop_j = _softplus(qj) + _softplus(bj) * pj_

    # Direct row stores (no concatenate / sublane shuffle).
    out_ref[0:1, :] = _softplus(dot_i) * jnp.tanh(pop_i)
    out_ref[1:2, :] = _softplus(dot_j) * jnp.tanh(pop_j)
    out_ref[2:3, :] = sq


def _choose_tiling(batch, cap=8192):
    """Lane-dense tile width (multiple of 128, <= cap) and tile count."""
    b128 = ((batch + 127) // 128) * 128
    num_tiles = max(1, -(-b128 // cap))
    per_tile = -(-b128 // num_tiles)
    tb = ((per_tile + 127) // 128) * 128
    return tb, num_tiles


@functools.partial(jax.jit, static_argnames=("core_parallel",))
def tide_forward(params, item_popularity, user_indices, item_i_indices,
                 item_j_indices, *, core_parallel=False):
    """Mirrors TIDE.forward for backbone == 'MF'."""
    user_emb_t = params["user_embedding_t"]    # (D, num_users), pre-transposed
    item_emb_t = params["item_embedding_t"]    # (D, num_items), pre-transposed
    q = params["q"]                            # (num_items + 1,)
    b = params["b"]                            # (num_items + 1,)

    B = user_indices.shape[0]
    D = user_emb_t.shape[0]

    TB, num_tiles = _choose_tiling(B)
    B_pad = num_tiles * TB
    pad = B_pad - B

    # Pad the index arrays (with valid index 0); padded rows are trimmed below.
    uidx = jnp.pad(user_indices, (0, pad))
    iidx = jnp.pad(item_i_indices, (0, pad))
    jidx = jnp.pad(item_j_indices, (0, pad))

    # Glue: column gathers from the pre-transposed tables produce (D, B_pad)
    # directly (batch on lanes, no separate transpose). Carried as bf16 to
    # halve the dominant HBM stream feeding the kernel.
    u_t = jnp.take(user_emb_t, uidx, axis=1).astype(jnp.bfloat16)    # (D, B_pad)
    ii_t = jnp.take(item_emb_t, iidx, axis=1).astype(jnp.bfloat16)   # (D, B_pad)
    ij_t = jnp.take(item_emb_t, jidx, axis=1).astype(jnp.bfloat16)   # (D, B_pad)

    # Pack the six per-example scalars into a single lane-dense f32 array.
    scal = jnp.stack(
        [
            jnp.take(q, iidx), jnp.take(b, iidx), jnp.take(item_popularity, iidx),
            jnp.take(q, jidx), jnp.take(b, jidx), jnp.take(item_popularity, jidx),
        ],
        axis=0,
    ).astype(jnp.float32)                                            # (6, B_pad)

    # On v7x, pass core_parallel=True to shard the batch axis across both TCs.
    sem = pltpu.CORE_PARALLEL if core_parallel else pltpu.PARALLEL

    cost = pl.CostEstimate(
        flops=(9 * D + 24) * B_pad,
        transcendentals=10 * B_pad,
        bytes_accessed=(3 * D * 2 + (6 + 3) * 4) * B_pad,
    )

    out = pl.pallas_call(
        tide_kernel,
        out_shape=jax.ShapeDtypeStruct((3, B_pad), jnp.float32),
        grid=(num_tiles,),
        in_specs=[
            pl.BlockSpec((D, TB), lambda i: (0, i)),
            pl.BlockSpec((D, TB), lambda i: (0, i)),
            pl.BlockSpec((D, TB), lambda i: (0, i)),
            pl.BlockSpec((6, TB), lambda i: (0, i)),
        ],
        out_specs=pl.BlockSpec((3, TB), lambda i: (0, i)),
        compiler_params=pltpu.CompilerParams(
            dimension_semantics=(sem,),
            vmem_limit_bytes=32 * 1024 * 1024,
        ),
        cost_estimate=cost,
    )(u_t, ii_t, ij_t, scal)

    pred_i = out[0, :B]
    pred_j = out[1, :B]
    # reg_loss = 1/2 * (||u||^2 + ||i||^2 + ||j||^2) / B  (total B, not tile size).
    reg = 0.5 * jnp.sum(out[2, :B]) / float(B)
    return pred_i, pred_j, reg


def init_tide_params(key, num_users, num_items, embedding_dim, q_init=1.0, b_init=1.0):
    ku, ki = jax.random.split(key)
    # Tables are stored pre-transposed (D, N) so batched gathers land directly
    # in the lane-dense (D, B) layout used by the kernel.
    return {
        "user_embedding_t": 0.01 * jax.random.normal(ku, (embedding_dim, num_users), jnp.float32),
        "item_embedding_t": 0.01 * jax.random.normal(ki, (embedding_dim, num_items), jnp.float32),
        "q": jnp.ones((num_items + 1,), jnp.float32) * q_init,
        "b": jnp.ones((num_items + 1,), jnp.float32) * b_init,
    }


def tide_forward_ref(params, item_popularity, user_idx, item_i_idx, item_j_idx):
    """Pure-JAX f32 reference matching the PyTorch forward (MF backbone)."""
    u = params["user_embedding_t"][:, user_idx].T
    ii = params["item_embedding_t"][:, item_i_idx].T
    ij = params["item_embedding_t"][:, item_j_idx].T
    B = user_idx.shape[0]
    reg = 0.5 * (jnp.sum(u * u) + jnp.sum(ii * ii) + jnp.sum(ij * ij)) / float(B)
    pop_i = _softplus(params["q"][item_i_idx]) + _softplus(params["b"][item_i_idx]) * item_popularity[item_i_idx]
    pop_j = _softplus(params["q"][item_j_idx]) + _softplus(params["b"][item_j_idx]) * item_popularity[item_j_idx]
    pred_i = _softplus(jnp.sum(u * ii, -1)) * jnp.tanh(pop_i)
    pred_j = _softplus(jnp.sum(u * ij, -1)) * jnp.tanh(pop_j)
    return pred_i, pred_j, reg


if __name__ == "__main__":
    num_users, num_items, embedding_dim, batch = 32, 48, 32, 8
    key = jax.random.PRNGKey(0)
    k_params, k_pop, k_u, k_i, k_j = jax.random.split(key, 5)

    # TIDE.__init__: method_config = {'q': 1.0, 'b': 1.0}
    params = init_tide_params(k_params, num_users, num_items, embedding_dim,
                              q_init=1.0, b_init=1.0)
    item_popularity = jax.random.uniform(k_pop, (num_items,), jnp.float32)

    user_indices = jax.random.randint(k_u, (batch,), 0, num_users)
    item_i_indices = jax.random.randint(k_i, (batch,), 0, num_items)
    item_j_indices = jax.random.randint(k_j, (batch,), 0, num_items)

    pred_i, pred_j, reg = tide_forward(params, item_popularity,
                                       user_indices, item_i_indices, item_j_indices)
    jax.block_until_ready((pred_i, pred_j, reg))

    # Correctness check against pure-JAX f32 reference (kernel carries the
    # gathered embeddings in bf16, so use a bf16-appropriate tolerance).
    ref_i, ref_j, ref_reg = tide_forward_ref(params, item_popularity,
                                             user_indices, item_i_indices, item_j_indices)
    assert jnp.allclose(pred_i, ref_i, rtol=1e-3, atol=3e-4), (pred_i, ref_i)
    assert jnp.allclose(pred_j, ref_j, rtol=1e-3, atol=3e-4), (pred_j, ref_j)
    assert jnp.allclose(reg, ref_reg, rtol=1e-3, atol=1e-4), (reg, ref_reg)

    print("KERNEL_OK")
</pallas_src>

<mosaic_0001>
module attributes {stable_mosaic.version = 11 : i64} {
  func.func @tide_kernel(%arg0: i32, %arg1: memref<32x128xbf16, #tpu.memory_space<vmem>>, %arg2: memref<32x128xbf16, #tpu.memory_space<vmem>>, %arg3: memref<32x128xbf16, #tpu.memory_space<vmem>>, %arg4: memref<6x128xf32, #tpu.memory_space<vmem>>, %arg5: memref<3x128xf32, #tpu.memory_space<vmem>>) attributes {dimension_semantics = [#tpu.dimension_semantics<parallel>], iteration_bounds = array<i64: 1>, scalar_prefetch = 0 : i64, scratch_operands = 0 : i64, tpu.core_type = #tpu.core_type<tc>, window_params = [{transform_indices = @transform_0, window_bounds = array<i64: 32, 128>}, {transform_indices = @transform_1, window_bounds = array<i64: 32, 128>}, {transform_indices = @transform_2, window_bounds = array<i64: 32, 128>}, {transform_indices = @transform_3, window_bounds = array<i64: 6, 128>}, {transform_indices = @transform_4, window_bounds = array<i64: 3, 128>}]} {
    %c0 = arith.constant 0 : index
    %c0_0 = arith.constant 0 : index
    %0 = vector.load %arg1[%c0, %c0_0] : memref<32x128xbf16, #tpu.memory_space<vmem>>, vector<32x128xbf16>
    %1 = arith.extf %0 : vector<32x128xbf16> to vector<32x128xf32>
    %c0_1 = arith.constant 0 : index
    %c0_2 = arith.constant 0 : index
    %2 = vector.load %arg2[%c0_1, %c0_2] : memref<32x128xbf16, #tpu.memory_space<vmem>>, vector<32x128xbf16>
    %3 = arith.extf %2 : vector<32x128xbf16> to vector<32x128xf32>
    %c0_3 = arith.constant 0 : index
    %c0_4 = arith.constant 0 : index
    %4 = vector.load %arg3[%c0_3, %c0_4] : memref<32x128xbf16, #tpu.memory_space<vmem>>, vector<32x128xbf16>
    %5 = arith.extf %4 : vector<32x128xbf16> to vector<32x128xf32>
    %c0_5 = arith.constant 0 : index
    %c0_6 = arith.constant 0 : index
    %6 = vector.load %arg4[%c0_5, %c0_6] : memref<6x128xf32, #tpu.memory_space<vmem>>, vector<6x128xf32>
    %7 = arith.mulf %1, %3 : vector<32x128xf32>
    %cst = arith.constant dense<0.000000e+00> : vector<128xf32>
    %8 = vector.multi_reduction <add>, %7, %cst [0] : vector<32x128xf32> to vector<128xf32>
    %9 = vector.shape_cast %8 : vector<128xf32> to vector<1x128xf32>
    %10 = arith.mulf %1, %5 : vector<32x128xf32>
    %cst_7 = arith.constant dense<0.000000e+00> : vector<128xf32>
    %11 = vector.multi_reduction <add>, %10, %cst_7 [0] : vector<32x128xf32> to vector<128xf32>
    %12 = vector.shape_cast %11 : vector<128xf32> to vector<1x128xf32>
    %13 = arith.mulf %1, %1 : vector<32x128xf32>
    %14 = arith.mulf %3, %3 : vector<32x128xf32>
    %15 = arith.addf %13, %14 : vector<32x128xf32>
    %16 = arith.mulf %5, %5 : vector<32x128xf32>
    %17 = arith.addf %15, %16 : vector<32x128xf32>
    %cst_8 = arith.constant dense<0.000000e+00> : vector<128xf32>
    %18 = vector.multi_reduction <add>, %17, %cst_8 [0] : vector<32x128xf32> to vector<128xf32>
    %19 = vector.shape_cast %18 : vector<128xf32> to vector<1x128xf32>
    %20 = vector.extract_strided_slice %6 {offsets = [0, 0], sizes = [1, 128], strides = [1, 1]} : vector<6x128xf32> to vector<1x128xf32>
    %21 = vector.extract_strided_slice %6 {offsets = [1, 0], sizes = [1, 128], strides = [1, 1]} : vector<6x128xf32> to vector<1x128xf32>
    %22 = vector.extract_strided_slice %6 {offsets = [2, 0], sizes = [1, 128], strides = [1, 1]} : vector<6x128xf32> to vector<1x128xf32>
    %23 = vector.extract_strided_slice %6 {offsets = [3, 0], sizes = [1, 128], strides = [1, 1]} : vector<6x128xf32> to vector<1x128xf32>
    %24 = vector.extract_strided_slice %6 {offsets = [4, 0], sizes = [1, 128], strides = [1, 1]} : vector<6x128xf32> to vector<1x128xf32>
    %25 = vector.extract_strided_slice %6 {offsets = [5, 0], sizes = [1, 128], strides = [1, 1]} : vector<6x128xf32> to vector<1x128xf32>
    %cst_9 = arith.constant 0.000000e+00 : f32
    %26 = vector.broadcast %cst_9 : f32 to vector<1x128xf32>
    %27 = arith.maximumf %20, %26 : vector<1x128xf32>
    %28 = vector.broadcast %cst_9 : f32 to vector<1x128xf32>
    %29 = arith.subf %20, %28 : vector<1x128xf32>
    %30 = arith.cmpf one, %29, %29 : vector<1x128xf32>
    %31 = vector.broadcast %cst_9 : f32 to vector<1x128xf32>
    %32 = arith.addf %20, %31 : vector<1x128xf32>
    %33 = math.absf %29 : vector<1x128xf32>
    %cst_10 = arith.constant 0.000000e+00 : f32
    %34 = vector.broadcast %cst_10 : f32 to vector<1x128xf32>
    %35 = arith.subf %34, %33 : vector<1x128xf32>
    %36 = math.exp %35 : vector<1x128xf32>
    %37 = math.log1p %36 : vector<1x128xf32>
    %38 = arith.addf %27, %37 : vector<1x128xf32>
    %39 = arith.select %30, %32, %38 : vector<1x128xi1>, vector<1x128xf32>
    %cst_11 = arith.constant 0.000000e+00 : f32
    %40 = vector.broadcast %cst_11 : f32 to vector<1x128xf32>
    %41 = arith.maximumf %21, %40 : vector<1x128xf32>
    %42 = vector.broadcast %cst_11 : f32 to vector<1x128xf32>
    %43 = arith.subf %21, %42 : vector<1x128xf32>
    %44 = arith.cmpf one, %43, %43 : vector<1x128xf32>
    %45 = vector.broadcast %cst_11 : f32 to vector<1x128xf32>
    %46 = arith.addf %21, %45 : vector<1x128xf32>
    %47 = math.absf %43 : vector<1x128xf32>
    %cst_12 = arith.constant 0.000000e+00 : f32
    %48 = vector.broadcast %cst_12 : f32 to vector<1x128xf32>
    %49 = arith.subf %48, %47 : vector<1x128xf32>
    %50 = math.exp %49 : vector<1x128xf32>
    %51 = math.log1p %50 : vector<1x128xf32>
    %52 = arith.addf %41, %51 : vector<1x128xf32>
    %53 = arith.select %44, %46, %52 : vector<1x128xi1>, vector<1x128xf32>
    %54 = arith.mulf %53, %22 : vector<1x128xf32>
    %55 = arith.addf %39, %54 : vector<1x128xf32>
    %cst_13 = arith.constant 0.000000e+00 : f32
    %56 = vector.broadcast %cst_13 : f32 to vector<1x128xf32>
    %57 = arith.maximumf %23, %56 : vector<1x128xf32>
    %58 = vector.broadcast %cst_13 : f32 to vector<1x128xf32>
    %59 = arith.subf %23, %58 : vector<1x128xf32>
    %60 = arith.cmpf one, %59, %59 : vector<1x128xf32>
    %61 = vector.broadcast %cst_13 : f32 to vector<1x128xf32>
    %62 = arith.addf %23, %61 : vector<1x128xf32>
    %63 = math.absf %59 : vector<1x128xf32>
    %cst_14 = arith.constant 0.000000e+00 : f32
    %64 = vector.broadcast %cst_14 : f32 to vector<1x128xf32>
    %65 = arith.subf %64, %63 : vector<1x128xf32>
    %66 = math.exp %65 : vector<1x128xf32>
    %67 = math.log1p %66 : vector<1x128xf32>
    %68 = arith.addf %57, %67 : vector<1x128xf32>
    %69 = arith.select %60, %62, %68 : vector<1x128xi1>, vector<1x128xf32>
    %cst_15 = arith.constant 0.000000e+00 : f32
    %70 = vector.broadcast %cst_15 : f32 to vector<1x128xf32>
    %71 = arith.maximumf %24, %70 : vector<1x128xf32>
    %72 = vector.broadcast %cst_15 : f32 to vector<1x128xf32>
    %73 = arith.subf %24, %72 : vector<1x128xf32>
    %74 = arith.cmpf one, %73, %73 : vector<1x128xf32>
    %75 = vector.broadcast %cst_15 : f32 to vector<1x128xf32>
    %76 = arith.addf %24, %75 : vector<1x128xf32>
    %77 = math.absf %73 : vector<1x128xf32>
    %cst_16 = arith.constant 0.000000e+00 : f32
    %78 = vector.broadcast %cst_16 : f32 to vector<1x128xf32>
    %79 = arith.subf %78, %77 : vector<1x128xf32>
    %80 = math.exp %79 : vector<1x128xf32>
    %81 = math.log1p %80 : vector<1x128xf32>
    %82 = arith.addf %71, %81 : vector<1x128xf32>
    %83 = arith.select %74, %76, %82 : vector<1x128xi1>, vector<1x128xf32>
    %84 = arith.mulf %83, %25 : vector<1x128xf32>
    %85 = arith.addf %69, %84 : vector<1x128xf32>
    %cst_17 = arith.constant 0.000000e+00 : f32
    %86 = vector.broadcast %cst_17 : f32 to vector<1x128xf32>
    %87 = arith.maximumf %9, %86 : vector<1x128xf32>
    %88 = vector.broadcast %cst_17 : f32 to vector<1x128xf32>
    %89 = arith.subf %9, %88 : vector<1x128xf32>
    %90 = arith.cmpf one, %89, %89 : vector<1x128xf32>
    %91 = vector.broadcast %cst_17 : f32 to vector<1x128xf32>
    %92 = arith.addf %9, %91 : vector<1x128xf32>
    %93 = math.absf %89 : vector<1x128xf32>
    %cst_18 = arith.constant 0.000000e+00 : f32
    %94 = vector.broadcast %cst_18 : f32 to vector<1x128xf32>
    %95 = arith.subf %94, %93 : vector<1x128xf32>
    %96 = math.exp %95 : vector<1x128xf32>
    %97 = math.log1p %96 : vector<1x128xf32>
    %98 = arith.addf %87, %97 : vector<1x128xf32>
    %99 = arith.select %90, %92, %98 : vector<1x128xi1>, vector<1x128xf32>
    %100 = math.tanh %55 : vector<1x128xf32>
    %101 = arith.mulf %99, %100 : vector<1x128xf32>
    %c0_19 = arith.constant 0 : index
    %c0_20 = arith.constant 0 : index
    %102 = vector.load %arg5[%c0_19, %c0_20] : memref<3x128xf32, #tpu.memory_space<vmem>>, vector<1x128xf32>
    tpu.vector_store %arg5[%c0_19, %c0_20], %101 {strides = array<i32>} : memref<3x128xf32, #tpu.memory_space<vmem>>, vector<1x128xf32>,
    %cst_21 = arith.constant 0.000000e+00 : f32
    %103 = vector.broadcast %cst_21 : f32 to vector<1x128xf32>
    %104 = arith.maximumf %12, %103 : vector<1x128xf32>
    %105 = vector.broadcast %cst_21 : f32 to vector<1x128xf32>
    %106 = arith.subf %12, %105 : vector<1x128xf32>
    %107 = arith.cmpf one, %106, %106 : vector<1x128xf32>
    %108 = vector.broadcast %cst_21 : f32 to vector<1x128xf32>
    %109 = arith.addf %12, %108 : vector<1x128xf32>
    %110 = math.absf %106 : vector<1x128xf32>
    %cst_22 = arith.constant 0.000000e+00 : f32
    %111 = vector.broadcast %cst_22 : f32 to vector<1x128xf32>
    %112 = arith.subf %111, %110 : vector<1x128xf32>
    %113 = math.exp %112 : vector<1x128xf32>
    %114 = math.log1p %113 : vector<1x128xf32>
    %115 = arith.addf %104, %114 : vector<1x128xf32>
    %116 = arith.select %107, %109, %115 : vector<1x128xi1>, vector<1x128xf32>
    %117 = math.tanh %85 : vector<1x128xf32>
    %118 = arith.mulf %116, %117 : vector<1x128xf32>
    %c1 = arith.constant 1 : index
    %c0_23 = arith.constant 0 : index
    %119 = vector.load %arg5[%c1, %c0_23] : memref<3x128xf32, #tpu.memory_space<vmem>>, vector<1x128xf32>
    tpu.vector_store %arg5[%c1, %c0_23], %118 {strides = array<i32>} : memref<3x128xf32, #tpu.memory_space<vmem>>, vector<1x128xf32>,
    %c2 = arith.constant 2 : index
    %c0_24 = arith.constant 0 : index
    %120 = vector.load %arg5[%c2, %c0_24] : memref<3x128xf32, #tpu.memory_space<vmem>>, vector<1x128xf32>
    tpu.vector_store %arg5[%c2, %c0_24], %19 {strides = array<i32>} : memref<3x128xf32, #tpu.memory_space<vmem>>, vector<1x128xf32>,
    return
  }
  func.func @transform_0(%arg0: i32) -> (i32, i32) {
    %c0_i32 = arith.constant 0 : i32
    %c0_i32_0 = arith.constant 0 : i32
    return %c0_i32, %arg0 : i32, i32
  }
  func.func @transform_1(%arg0: i32) -> (i32, i32) {
    %c0_i32 = arith.constant 0 : i32
    %c0_i32_0 = arith.constant 0 : i32
    return %c0_i32, %arg0 : i32, i32
  }
  func.func @transform_2(%arg0: i32) -> (i32, i32) {
    %c0_i32 = arith.constant 0 : i32
    %c0_i32_0 = arith.constant 0 : i32
    return %c0_i32, %arg0 : i32, i32
  }
  func.func @transform_3(%arg0: i32) -> (i32, i32) {
    %c0_i32 = arith.constant 0 : i32
    %c0_i32_0 = arith.constant 0 : i32
    return %c0_i32, %arg0 : i32, i32
  }
  func.func @transform_4(%arg0: i32) -> (i32, i32) {
    %c0_i32 = arith.constant 0 : i32
    %c0_i32_0 = arith.constant 0 : i32
    return %c0_i32, %arg0 : i32, i32
  }
}

</mosaic_0001>

<bundles_post_ra>
// kernel: tide_forward.1
= control target key start
LH: loop header
LB: loop body
LE: loop exit
PB: predicated region body
PF: predicated region fallthrough
CT: control target
= control target key end

     0   :  { %s287_s0 = inlined_call_operand.vmem [shape: bf16[32,128], index: 0, kind: input, shape index: {}]   ;;  %s288_s1 = inlined_call_operand.vmem [shape: bf16[32,128], index: 1, kind: input, shape index: {}]   ;;  %s289_s3 = inlined_call_operand.vmem [shape: f32[6,128], index: 3, kind: input, shape index: {}]   ;;  %s290_s2 = inlined_call_operand.vmem [shape: bf16[32,128], index: 2, kind: input, shape index: {}]   ;;  %s291_s4 = inlined_call_operand.vmem [shape: f32[3,128], index: 4, kind: output, shape index: {}]  }
   0x1   :  { %v170_v0 = vld [vmem:[%s287_s0] sm:$0xff]   ;;  %v193_v1 = vld [vmem:[%s287_s0 + $0x8] sm:$0xff]  }
   0x2   :  { %v178_v2 = vld [vmem:[%s288_s1] sm:$0xff]   ;;  %v171_v3 = vunpack.c.l.bf16 %v170_v0  ;;  %v172_v4 = vunpack.c.h.bf16 %v170_v0  ;;  %v175_v5 = vunpack.c.l.bf16 %v193_v1  ;;  %v176_v6 = vunpack.c.h.bf16 %v193_v1  ;;  %v194_v7 = vld [vmem:[%s288_s1 + $0x8] sm:$0xff]  }
   0x3   :  { %v250_v8 = vld [vmem:[%s289_s3] sm:$0x3f]  ;;  %v179_v9 = vunpack.c.l.bf16 %v178_v2  ;;  %v180_v10 = vunpack.c.h.bf16 %v178_v2  ;;  %v183_v11 = vunpack.c.l.bf16 %v194_v7  ;;  %v184_v12 = vunpack.c.h.bf16 %v194_v7  ;;  %v195_v14 = vld [vmem:[%s290_s2 + $0x8] sm:$0xff]  }
   0x4   :  { %v186_v13 = vld [vmem:[%s290_s2] sm:$0xff]   ;;  %v100_v15 = vand.u32 2147483647, %v250_v8  ;;  %v191_v23 = vunpack.c.l.bf16 %v195_v14  ;;  %v192_v25 = vunpack.c.h.bf16 %v195_v14  ;;  %v68_v26 = vmul.f32 %v171_v3, %v171_v3 }
   0x5   :  { %v42_v16 = vmul.f32 %v179_v9, %v171_v3  ;;  %v43_v17 = vmul.f32 %v180_v10, %v172_v4  ;;  %v44_v18 = vmul.f32 %v183_v11, %v175_v5  ;;  %v45_v19 = vmul.f32 %v184_v12, %v176_v6 }
   0x6   :  { %v101_v20 = vsub.f32 0.0, %v100_v15  ;;  %v187_v21 = vunpack.c.l.bf16 %v186_v13  ;;  %v188_v22 = vunpack.c.h.bf16 %v186_v13  ;;  %v69_v27 = vmul.f32 %v172_v4, %v172_v4 }
   0x7   :  { %v46_v24 = vadd.f32 %v43_v17, %v42_v16  ;;  %v57_v31 = vmul.f32 %v191_v23, %v175_v5  ;;  %v58_v33 = vmul.f32 %v192_v25, %v176_v6  ;;  %v70_v34 = vmul.f32 %v175_v5, %v175_v5 }
   0x8   :  { %v102_v28 = vmul.f32 1.442695, %v101_v20  ;;  %v55_v29 = vmul.f32 %v187_v21, %v171_v3  ;;  %v56_v30 = vmul.f32 %v188_v22, %v172_v4  ;;  %v71_v35 = vmul.f32 %v176_v6, %v176_v6 }
   0x9   :  { %v47_v32 = vadd.f32 %v46_v24, %v44_v18  ;;  %v72_v37 = vmul.f32 %v179_v9, %v179_v9  ;;  %v73_v38 = vmul.f32 %v180_v10, %v180_v10  ;;  %v74_v40 = vmul.f32 %v183_v11, %v183_v11 }
   0xa   :  { %196 = vpow2.f32 %v102_v28  ;;  %v59_v36 = vadd.f32 %v56_v30, %v55_v29  ;;  %v75_v41 = vmul.f32 %v184_v12, %v184_v12  ;;  %v80_v42 = vmul.f32 %v187_v21, %v187_v21 }
   0xb   :  { %v48_v39 = vadd.f32 %v47_v32, %v45_v19  ;;  %v76_v44 = vadd.f32 %v72_v37, %v68_v26  ;;  %v77_v45 = vadd.f32 %v73_v38, %v69_v27  ;;  %v81_v46 = vmul.f32 %v188_v22, %v188_v22 }
   0xc   :  { %v60_v43 = vadd.f32 %v59_v36, %v57_v31  ;;  %v78_v48 = vadd.f32 %v74_v40, %v70_v34  ;;  %v79_v49 = vadd.f32 %v75_v41, %v71_v35  ;;  %v82_v50 = vmul.f32 %v191_v23, %v191_v23 }
   0xd   :  { %v49_v47 = vrot.slane %v48_v39, 4  ;;  %v83_v52 = vmul.f32 %v192_v25, %v192_v25  ;;  %v84_v53 = vadd.f32 %v80_v42, %v76_v44  ;;  %v85_v54 = vadd.f32 %v81_v46, %v77_v45 }
   0xe   :  { %v61_v51 = vadd.f32 %v60_v43, %v58_v33  ;;  %v86_v56 = vadd.f32 %v82_v50, %v78_v48  ;;  %v97_v27 = vmax.f32 %v250_v8, 0.0  ;;  %vm98_vm1 = vcmp.ne.f32.partialorder %v250_v8, %v250_v8 }
   0xf   :  { %v50_v55 = vadd.f32 %v49_v47, %v48_v39  ;;  %v87_v58 = vadd.f32 %v83_v52, %v79_v49  ;;  %v88_v59 = vadd.f32 %v85_v54, %v84_v53  ;;  %v116_v30 = vrot.slane %v250_v8, 1 }
  0x10   :  { %v62_v57 = vrot.slane %v61_v51, 4 }
  0x11   :  { %v51_v60 = vrot.slane %v50_v55, 2  ;;  %v89_v62 = vadd.f32 %v88_v59, %v86_v56 }
  0x12   :  { %v63_v61 = vadd.f32 %v62_v57, %v61_v51 }
  0x13   :  { %v52_v63 = vadd.f32 %v51_v60, %v50_v55  ;;  %v90_v2 = vadd.f32 %v89_v62, %v87_v58 }
  0x14   :  { %v197_v0 = vpop.eup %196  ;;  %v64_v1 = vrot.slane %v63_v61, 2 }
  0x15   :  { %v53_v3 = vrot.slane %v52_v63, 1  ;;  %v104_v4 = vadd.f32 1.0, %v197_v0  ;;  %v91_v6 = vrot.slane %v90_v2, 4  ;;  %v107_v9 = vmul.f32 -0.5, %v197_v0 }
  0x16   :  { %v65_v5 = vadd.f32 %v64_v1, %v63_v61  ;;  %v110_v19 = vand.u32 2147483647, %v197_v0 }
  0x17   :  { %v259_v7 = vadd.f32 %v53_v3, %v52_v63  ;;  %198 = vlog2.f32 %v104_v4  ;;  %v92_v11 = vadd.f32 %v91_v6, %v90_v2  ;;  %v108_v16 = vadd.f32 1.0, %v107_v9 }
  0x18   :  { %v66_v10 = vrot.slane %v65_v5, 1  ;;  %vm111_vm0 = vcmp.lt.f32.partialorder %v110_v19, 0.0004427343 }
  0x19   :  { %v126_v12 = vand.u32 2147483647, %v259_v7  ;;  %v93_v14 = vrot.slane %v92_v11, 2  ;;  %v109_v23 = vmul.f32 %v197_v0, %v108_v16  ;;  %vm124_vm3 = vcmp.ne.f32.partialorder %v259_v7, %v259_v7 }
  0x1a   :  { %v262_v13 = vadd.f32 %v66_v10, %v65_v5 }
  0x1b   :  { %v127_v15 = vsub.f32 0.0, %v126_v12  ;;  %v94_v18 = vadd.f32 %v93_v14, %v92_v11 }
  0x1c   :  { %v147_v17 = vand.u32 2147483647, %v262_v13  ;;  %v144_v52 = vmax.f32 %v262_v13, 0.0  ;;  %vm145_vm5 = vcmp.ne.f32.partialorder %v262_v13, %v262_v13 }
  0x1d   :  { %v128_v20 = vmul.f32 1.442695, %v127_v15  ;;  %v95_v22 = vrot.slane %v94_v18, 1 }
  0x1e   :  { %v148_v21 = vsub.f32 0.0, %v147_v17 }
  0x1f   :  { %200 = vpow2.f32 %v128_v20  ;;  %v96_v25 = vadd.f32 %v95_v22, %v94_v18 }
  0x20   :  { %v149_v24 = vmul.f32 1.442695, %v148_v21 }
  0x21   :  { %v199_v26 = vpop.eup %198  ;;  %164 = vst [vmem:[%s291_s4 + $0x2] sm:$0x1] %v96_v25 }
  0x22   :  { %v106_v28 = vmul.f32 0.6931472, %v199_v26  ;;  %202 = vpow2.f32 %v149_v24 }
  0x24   :  { %v112_v29 = vsel %vm111_vm0, %v109_v23, %v106_v28 }
  0x25   :  { %v113_v31 = vadd.f32 %v112_v29, %v97_v27 }
  0x27   :  { %v114_v32 = vsel %vm98_vm1, %v250_v8, %v113_v31  ;;  %v123_v8 = vmax.f32 %v259_v7, 0.0 }
  0x28   :  { %v118_v33 = vmul.f32 %v116_v30, %v114_v32 }
  0x29   :  { %v201_v34 = vpop.eup %200 }
  0x2a   :  { %v120_v35 = vrot.slane %v118_v33, 1  ;;  %v130_v36 = vadd.f32 1.0, %v201_v34  ;;  %v133_v39 = vmul.f32 -0.5, %v201_v34  ;;  %v136_v43 = vand.u32 2147483647, %v201_v34 }
  0x2c   :  { %v203_v37 = vpop.eup %202  ;;  %v122_v38 = vadd.f32 %v120_v35, %v114_v32  ;;  %204 = vlog2.f32 %v130_v36  ;;  %v134_v42 = vadd.f32 1.0, %v133_v39  ;;  %vm137_vm2 = vcmp.lt.f32.partialorder %v136_v43, 0.0004427343 }
  0x2d   :  { %v151_v40 = vadd.f32 1.0, %v203_v37  ;;  %v154_v41 = vmul.f32 -0.5, %v203_v37  ;;  %v157_v46 = vand.u32 2147483647, %v203_v37 }
  0x2e   :  { %v135_v45 = vmul.f32 %v201_v34, %v134_v42 }
  0x2f   :  { %206 = vlog2.f32 %v151_v40  ;;  %v155_v44 = vadd.f32 1.0, %v154_v41  ;;  %vm158_vm4 = vcmp.lt.f32.partialorder %v157_v46, 0.0004427343 }
  0x30   :  { %208 = vtanh.f32 %v122_v38 }
  0x31   :  { %v156_v49 = vmul.f32 %v203_v37, %v155_v44 }
  0x36   :  { %v205_v47 = vpop.eup %204 }
  0x37   :  { %v132_v48 = vmul.f32 0.6931472, %v205_v47 }
  0x39   :  { %v207_v50 = vpop.eup %206  ;;  %v138_v51 = vsel %vm137_vm2, %v135_v45, %v132_v48 }
  0x3a   :  { %v209_v53 = vpop.eup %208  ;;  %v139_v54 = vadd.f32 %v138_v51, %v123_v8  ;;  %v153_v55 = vmul.f32 0.6931472, %v207_v50 }
  0x3c   :  { %v140_v56 = vsel %vm124_vm3, %v259_v7, %v139_v54  ;;  %v159_v57 = vsel %vm158_vm4, %v156_v49, %v153_v55 }
  0x3d   :  { %v142_v58 = vmul.f32 %v209_v53, %v140_v56  ;;  %v160_v59 = vadd.f32 %v159_v57, %v144_v52 }
  0x3f   :  { %143 = vst [vmem:[%s291_s4] sm:$0x1] %v142_v58  ;;  %v161_v60 = vsel %vm145_vm5, %v262_v13, %v160_v59 }
  0x40   :  { %v162_v61 = vmul.f32 %v209_v53, %v161_v60 }
  0x42   :  { %163 = vst [vmem:[%s291_s4 - $0x2] sm:$0x8] %v162_v61 }

</bundles_post_ra>
